<compile_context>
chip_gen: v7x
topology: tpu7x:2x2x1
jax: 0.10.0
libtpu: 0.0.40
codegen_flags: <defaults>
</compile_context>

<pallas_src>
import functools

import numpy as np

import jax
import jax.numpy as jnp
from jax.experimental import pallas as pl
from jax.experimental.pallas import tpu as pltpu

KH = KW = 3  # kernel_size=3, padding=1 ('same')


def _round_up(x, m):
    return (x + m - 1) // m * m


def _conv3x3_lrelu_kernel(x_ref, w_ref, b_ref, o_ref, *, wp, cin_p, nb, deep_k):
    """3x3 'same' conv + bias + LeakyReLU(0.2) for `nb` images per grid step.

    x_ref: (nb, Cin_p, Lp) compute dtype -- zero-padded, flattened spatial.
    w_ref: (Cout, 9*Cin_p) compute dtype -- columns (kh, kw) tap-major, ci-minor.
    b_ref: (Cout, 1)       f32.
    o_ref: (nb, Cout, L)   compute dtype, L = H*Wp (padded-width flattened).
    """
    L = o_ref.shape[-1]
    w = w_ref[...]                                           # (Cout, 9*Cin_p)
    bias = b_ref[...]                                        # (Cout, 1) f32
    # Each 3x3 tap is a constant shift kh*Wp + kw along the flattened spatial
    # axis -> 9 static lane-offset slices.
    offs = [kh * wp + kw for kh in range(KH) for kw in range(KW)]

    for b in range(nb):                                      # static unroll
        x = x_ref[b]                                         # (Cin_p, Lp)
        if deep_k:
            # Small Cin: stack the 9 taps on the sublane axis and do a single
            # deep-K MXU matmul (K = 9*Cin_p).
            patches = jnp.concatenate(
                [x[:, off: off + L] for off in offs], axis=0)    # (9*Cin_p, L)
            acc = jnp.dot(w, patches, preferred_element_type=jnp.float32)
        else:
            # Large Cin: each tap already has full MXU K, so accumulate 9
            # matmuls instead of materializing the 9x-input im2col patch.
            acc = jnp.zeros((w.shape[0], L), jnp.float32)
            for t, off in enumerate(offs):
                acc = acc + jnp.dot(w[:, t * cin_p:(t + 1) * cin_p],
                                    x[:, off: off + L],
                                    preferred_element_type=jnp.float32)
        y = acc + bias                                       # f32, lane bcast
        o_ref[b] = jnp.maximum(y, 0.2 * y).astype(o_ref.dtype)  # LeakyReLU(0.2)


def conv_block_forward(x_nchw, weight, bias, *, compute_dtype=jnp.bfloat16,
                       images_per_step=None):
    """ConvBlock default forward: 3x3 'same' conv (+bias) -> LeakyReLU(0.2).

    x_nchw: (N, Cin, H, W); weight: (Cout, Cin, 3, 3) [PyTorch OIHW];
    bias: (Cout,).  Returns (N, Cout, H, W) in `compute_dtype` (bf16 default).
    """
    N, Cin, H, W = x_nchw.shape
    Cout = weight.shape[0]
    itemsize = np.dtype(compute_dtype).itemsize

    # Pad Cin to the sublane pack of the compute dtype (bf16: 16 rows/vreg).
    pack = 8 * (4 // itemsize)
    cin_p = _round_up(Cin, pack)

    # Padded width: 1 left pad + >=1 right pad. For large W, round Wp up to a
    # lane multiple (only if the waste is small) so kh*Wp shifts are whole-vreg.
    wp = W + 2
    if W >= 100:
        aligned = _round_up(wp, 128)
        if aligned - wp <= max(wp // 8, 2):
            wp = aligned
    L = H * wp                    # flattened (padded-width) output columns
    Lp = (H + 3) * wp             # 1 top + 2 bottom pad rows so all 9 shifted
                                  # L-long tap slices stay in bounds

    # Fold several images into one grid step while the per-step working set is
    # small (amortizes ~0.35 us/step pipeline overhead at toy sizes).
    if images_per_step is None:
        per_img = cin_p * Lp * itemsize + Cout * L * (itemsize + 4)
        images_per_step = max(1, min(N, (2 << 20) // max(per_img, 1)))
    nb = max(1, min(int(images_per_step), N))
    while N % nb:                 # keep the grid exact
        nb -= 1

    # Single fused cast+pad (channels -> cin_p, rows +1/+2, cols +1/+(wp-W-1));
    # the minor-dim reshape below is free.
    x_pad = jnp.pad(x_nchw.astype(compute_dtype),
                    ((0, 0), (0, cin_p - Cin), (1, 2), (1, wp - W - 1)))
    x_flat = x_pad.reshape(N, cin_p, Lp)

    # (Cout, Cin, 3, 3) OIHW -> (Cout, KH, KW, cin_p) -> (Cout, 9*cin_p) so
    # column (kh*KW + kw)*cin_p + ci matches the patch-row order in the kernel.
    w_mat = jnp.transpose(weight, (0, 2, 3, 1)).astype(compute_dtype)
    w_mat = jnp.pad(w_mat, ((0, 0), (0, 0), (0, 0), (0, cin_p - Cin)))
    w_mat = w_mat.reshape(Cout, KH * KW * cin_p)
    b_col = bias.astype(jnp.float32).reshape(Cout, 1)

    # Per-generation VMEM budget: half of physical (v5e/v6e 128 MiB -> 64 MiB,
    # v7x 64 MiB -> 32 MiB) instead of a hardcoded limit.
    try:
        phys_vmem = pltpu.get_tpu_info().vmem_capacity_bytes
    except Exception:
        phys_vmem = 64 * 1024 * 1024          # conservative (v7x) fallback
    vmem_limit = int(min(phys_vmem // 2, 64 * 1024 * 1024))

    kernel = functools.partial(_conv3x3_lrelu_kernel, wp=wp, cin_p=cin_p,
                               nb=nb, deep_k=(cin_p < 128))

    out_flat = pl.pallas_call(
        kernel,
        out_shape=jax.ShapeDtypeStruct((N, Cout, L), compute_dtype),
        grid_spec=pltpu.PrefetchScalarGridSpec(
            num_scalar_prefetch=0,
            grid=(N // nb,),
            in_specs=[
                pl.BlockSpec((nb, cin_p, Lp), lambda i: (i, 0, 0)),
                pl.BlockSpec((Cout, KH * KW * cin_p), lambda i: (0, 0)),
                pl.BlockSpec((Cout, 1), lambda i: (0, 0)),
            ],
            out_specs=pl.BlockSpec((nb, Cout, L), lambda i: (i, 0, 0)),
        ),
        compiler_params=pltpu.CompilerParams(
            dimension_semantics=("parallel",),
            vmem_limit_bytes=vmem_limit,
        ),
    )(x_flat, w_mat, b_col)

    # Drop the (wp - W) pad columns per row. The pad lanes hold cross-row
    # wraparound values and must not be consumed; the reshape is free, the
    # slice is a bf16 XLA copy (see header note on removing it entirely by
    # making the padded layout the inter-layer activation format).
    return out_flat.reshape(N, Cout, H, wp)[:, :, :, :W]


def _reference(x_nchw, weight, bias):
    """Pure-JAX f32 reference (lax conv) for a silent correctness check."""
    y = jax.lax.conv_general_dilated(
        x_nchw.astype(jnp.float32), weight.astype(jnp.float32),
        window_strides=(1, 1), padding=((1, 1), (1, 1)),
        dimension_numbers=("NCHW", "OIHW", "NCHW"))
    y = y + bias.reshape(1, -1, 1, 1)
    return jnp.where(y >= 0, y, 0.2 * y)


if __name__ == "__main__":
    key = jax.random.PRNGKey(0)
    kx, kw_key, kb_key = jax.random.split(key, 3)

    N, Cin, H, W = 2, 4, 16, 16
    Cout = 8

    x = jax.random.normal(kx, (N, Cin, H, W), jnp.float32)
    # Deterministic synthetic Conv2d params: (Cout, Cin, 3, 3), (Cout,)
    weight = 0.1 * jax.random.normal(kw_key, (Cout, Cin, KH, KW), jnp.float32)
    bias = 0.1 * jax.random.normal(kb_key, (Cout,), jnp.float32)

    fwd = jax.jit(conv_block_forward)   # lets XLA fuse the cast/pad/slice glue
    out = jax.block_until_ready(fwd(x, weight, bias))
    ref = jax.block_until_ready(_reference(x, weight, bias))

    assert out.shape == (N, Cout, H, W)
    assert out.dtype == jnp.bfloat16
    # bf16 in/weights/out with f32 accumulation -> small tolerance.
    err = float(jnp.max(jnp.abs(out.astype(jnp.float32) - ref)))
    assert err < 5e-2, err

    print("KERNEL_OK")
</pallas_src>

<mosaic_0001>
module attributes {stable_mosaic.version = 11 : i64} {
  func.func @_conv3x3_lrelu_kernel(%arg0: i32, %arg1: memref<2x16x342xbf16, #tpu.memory_space<vmem>>, %arg2: memref<8x144xbf16, #tpu.memory_space<vmem>>, %arg3: memref<8x1xf32, #tpu.memory_space<vmem>>, %arg4: memref<2x8x288xbf16, #tpu.memory_space<vmem>>) attributes {dimension_semantics = [#tpu.dimension_semantics<parallel>], iteration_bounds = array<i64: 1>, scalar_prefetch = 0 : i64, scratch_operands = 0 : i64, tpu.core_type = #tpu.core_type<tc>, window_params = [{transform_indices = @transform_0, window_bounds = array<i64: 2, 16, 342>}, {pipeline_mode = #tpu.pipeline_mode<synchronous>, transform_indices = @transform_1, window_bounds = array<i64: 8, 144>}, {pipeline_mode = #tpu.pipeline_mode<synchronous>, transform_indices = @transform_2, window_bounds = array<i64: 8, 1>}, {transform_indices = @transform_3, window_bounds = array<i64: 2, 8, 288>}]} {
    %c0 = arith.constant 0 : index
    %c0_0 = arith.constant 0 : index
    %0 = vector.load %arg2[%c0, %c0_0] : memref<8x144xbf16, #tpu.memory_space<vmem>>, vector<8x144xbf16>
    %c0_1 = arith.constant 0 : index
    %c0_2 = arith.constant 0 : index
    %1 = vector.load %arg3[%c0_1, %c0_2] : memref<8x1xf32, #tpu.memory_space<vmem>>, vector<8x1xf32>
    %c0_3 = arith.constant 0 : index
    %c0_4 = arith.constant 0 : index
    %c0_5 = arith.constant 0 : index
    %2 = vector.load %arg1[%c0_3, %c0_4, %c0_5] : memref<2x16x342xbf16, #tpu.memory_space<vmem>>, vector<1x16x342xbf16>
    %3 = vector.shape_cast %2 : vector<1x16x342xbf16> to vector<16x342xbf16>
    %4 = vector.extract_strided_slice %3 {offsets = [0, 0], sizes = [16, 288], strides = [1, 1]} : vector<16x342xbf16> to vector<16x288xbf16>
    %5 = vector.extract_strided_slice %3 {offsets = [0, 1], sizes = [16, 288], strides = [1, 1]} : vector<16x342xbf16> to vector<16x288xbf16>
    %6 = vector.extract_strided_slice %3 {offsets = [0, 2], sizes = [16, 288], strides = [1, 1]} : vector<16x342xbf16> to vector<16x288xbf16>
    %7 = vector.extract_strided_slice %3 {offsets = [0, 18], sizes = [16, 288], strides = [1, 1]} : vector<16x342xbf16> to vector<16x288xbf16>
    %8 = vector.extract_strided_slice %3 {offsets = [0, 19], sizes = [16, 288], strides = [1, 1]} : vector<16x342xbf16> to vector<16x288xbf16>
    %9 = vector.extract_strided_slice %3 {offsets = [0, 20], sizes = [16, 288], strides = [1, 1]} : vector<16x342xbf16> to vector<16x288xbf16>
    %10 = vector.extract_strided_slice %3 {offsets = [0, 36], sizes = [16, 288], strides = [1, 1]} : vector<16x342xbf16> to vector<16x288xbf16>
    %11 = vector.extract_strided_slice %3 {offsets = [0, 37], sizes = [16, 288], strides = [1, 1]} : vector<16x342xbf16> to vector<16x288xbf16>
    %12 = vector.extract_strided_slice %3 {offsets = [0, 38], sizes = [16, 288], strides = [1, 1]} : vector<16x342xbf16> to vector<16x288xbf16>
    %13 = tpu.concatenate %4, %5, %6, %7, %8, %9, %10, %11, %12 in 0 : vector<16x288xbf16>, vector<16x288xbf16>, vector<16x288xbf16>, vector<16x288xbf16>, vector<16x288xbf16>, vector<16x288xbf16>, vector<16x288xbf16>, vector<16x288xbf16>, vector<16x288xbf16> -> vector<144x288xbf16>
    %cst = arith.constant dense<0.000000e+00> : vector<8x288xf32>
    %14 = tpu.matmul %0, %13, %cst {dimension_numbers = #tpu.dot_dimension_numbers<[1], [0], [0], [1], [0, 0, 1, 1], [], []>} : vector<8x144xbf16>, vector<144x288xbf16>, vector<8x288xf32> -> vector<8x288xf32>
    %15 = vector.broadcast %1 : vector<8x1xf32> to vector<8x288xf32>
    %16 = arith.addf %14, %15 : vector<8x288xf32>
    %cst_6 = arith.constant 2.000000e-01 : f32
    %17 = vector.broadcast %cst_6 : f32 to vector<8x288xf32>
    %18 = arith.mulf %17, %16 : vector<8x288xf32>
    %19 = arith.maximumf %16, %18 : vector<8x288xf32>
    %20 = arith.truncf %19 : vector<8x288xf32> to vector<8x288xbf16>
    %c0_7 = arith.constant 0 : index
    %c0_8 = arith.constant 0 : index
    %c0_9 = arith.constant 0 : index
    %21 = vector.load %arg4[%c0_7, %c0_8, %c0_9] : memref<2x8x288xbf16, #tpu.memory_space<vmem>>, vector<1x8x288xbf16>
    %22 = vector.shape_cast %21 : vector<1x8x288xbf16> to vector<8x288xbf16>
    %23 = vector.shape_cast %20 : vector<8x288xbf16> to vector<1x8x288xbf16>
    tpu.vector_store %arg4[%c0_7, %c0_8, %c0_9], %23 {strides = array<i32>} : memref<2x8x288xbf16, #tpu.memory_space<vmem>>, vector<1x8x288xbf16>,
    %c1 = arith.constant 1 : index
    %c0_10 = arith.constant 0 : index
    %c0_11 = arith.constant 0 : index
    %24 = vector.load %arg1[%c1, %c0_10, %c0_11] : memref<2x16x342xbf16, #tpu.memory_space<vmem>>, vector<1x16x342xbf16>
    %25 = vector.shape_cast %24 : vector<1x16x342xbf16> to vector<16x342xbf16>
    %26 = vector.extract_strided_slice %25 {offsets = [0, 0], sizes = [16, 288], strides = [1, 1]} : vector<16x342xbf16> to vector<16x288xbf16>
    %27 = vector.extract_strided_slice %25 {offsets = [0, 1], sizes = [16, 288], strides = [1, 1]} : vector<16x342xbf16> to vector<16x288xbf16>
    %28 = vector.extract_strided_slice %25 {offsets = [0, 2], sizes = [16, 288], strides = [1, 1]} : vector<16x342xbf16> to vector<16x288xbf16>
    %29 = vector.extract_strided_slice %25 {offsets = [0, 18], sizes = [16, 288], strides = [1, 1]} : vector<16x342xbf16> to vector<16x288xbf16>
    %30 = vector.extract_strided_slice %25 {offsets = [0, 19], sizes = [16, 288], strides = [1, 1]} : vector<16x342xbf16> to vector<16x288xbf16>
    %31 = vector.extract_strided_slice %25 {offsets = [0, 20], sizes = [16, 288], strides = [1, 1]} : vector<16x342xbf16> to vector<16x288xbf16>
    %32 = vector.extract_strided_slice %25 {offsets = [0, 36], sizes = [16, 288], strides = [1, 1]} : vector<16x342xbf16> to vector<16x288xbf16>
    %33 = vector.extract_strided_slice %25 {offsets = [0, 37], sizes = [16, 288], strides = [1, 1]} : vector<16x342xbf16> to vector<16x288xbf16>
    %34 = vector.extract_strided_slice %25 {offsets = [0, 38], sizes = [16, 288], strides = [1, 1]} : vector<16x342xbf16> to vector<16x288xbf16>
    %35 = tpu.concatenate %26, %27, %28, %29, %30, %31, %32, %33, %34 in 0 : vector<16x288xbf16>, vector<16x288xbf16>, vector<16x288xbf16>, vector<16x288xbf16>, vector<16x288xbf16>, vector<16x288xbf16>, vector<16x288xbf16>, vector<16x288xbf16>, vector<16x288xbf16> -> vector<144x288xbf16>
    %cst_12 = arith.constant dense<0.000000e+00> : vector<8x288xf32>
    %36 = tpu.matmul %0, %35, %cst_12 {dimension_numbers = #tpu.dot_dimension_numbers<[1], [0], [0], [1], [0, 0, 1, 1], [], []>} : vector<8x144xbf16>, vector<144x288xbf16>, vector<8x288xf32> -> vector<8x288xf32>
    %37 = vector.broadcast %1 : vector<8x1xf32> to vector<8x288xf32>
    %38 = arith.addf %36, %37 : vector<8x288xf32>
    %cst_13 = arith.constant 2.000000e-01 : f32
    %39 = vector.broadcast %cst_13 : f32 to vector<8x288xf32>
    %40 = arith.mulf %39, %38 : vector<8x288xf32>
    %41 = arith.maximumf %38, %40 : vector<8x288xf32>
    %42 = arith.truncf %41 : vector<8x288xf32> to vector<8x288xbf16>
    %c1_14 = arith.constant 1 : index
    %c0_15 = arith.constant 0 : index
    %c0_16 = arith.constant 0 : index
    %43 = vector.load %arg4[%c1_14, %c0_15, %c0_16] : memref<2x8x288xbf16, #tpu.memory_space<vmem>>, vector<1x8x288xbf16>
    %44 = vector.shape_cast %43 : vector<1x8x288xbf16> to vector<8x288xbf16>
    %45 = vector.shape_cast %42 : vector<8x288xbf16> to vector<1x8x288xbf16>
    tpu.vector_store %arg4[%c1_14, %c0_15, %c0_16], %45 {strides = array<i32>} : memref<2x8x288xbf16, #tpu.memory_space<vmem>>, vector<1x8x288xbf16>,
    return
  }
  func.func @transform_0(%arg0: i32) -> (i32, i32, i32) {
    %c0_i32 = arith.constant 0 : i32
    %c0_i32_0 = arith.constant 0 : i32
    %c0_i32_1 = arith.constant 0 : i32
    return %arg0, %c0_i32, %c0_i32_0 : i32, i32, i32
  }
  func.func @transform_1(%arg0: i32) -> (i32, i32) {
    %c0_i32 = arith.constant 0 : i32
    %c0_i32_0 = arith.constant 0 : i32
    %c0_i32_1 = arith.constant 0 : i32
    return %c0_i32, %c0_i32_0 : i32, i32
  }
  func.func @transform_2(%arg0: i32) -> (i32, i32) {
    %c0_i32 = arith.constant 0 : i32
    %c0_i32_0 = arith.constant 0 : i32
    %c0_i32_1 = arith.constant 0 : i32
    return %c0_i32, %c0_i32_0 : i32, i32
  }
  func.func @transform_3(%arg0: i32) -> (i32, i32, i32) {
    %c0_i32 = arith.constant 0 : i32
    %c0_i32_0 = arith.constant 0 : i32
    %c0_i32_1 = arith.constant 0 : i32
    return %arg0, %c0_i32, %c0_i32_0 : i32, i32, i32
  }
}

</mosaic_0001>

<bundles_post_ra>
// kernel: conv_block_forward.1
= control target key start
LH: loop header
LB: loop body
LE: loop exit
PB: predicated region body
PF: predicated region fallthrough
CT: control target
= control target key end

     0   :  { %v513_v1 = vmov 0   ;;  %s514_s16 = smov 127   ;;  %s515_s19 = smov 126   ;;  %vm144_vm0 = vcmask 130048   ;;  %vm43_vm1 = vcmask 1039360   ;;  %vm55_vm2 = vcmask 1031168   ;;  %s734_s0 = inlined_call_operand.vmem [shape: bf16[2,16,342], index: 0, kind: input, shape index: {}]   ;;  %s735_s1 = inlined_call_operand.vmem [shape: bf16[8,144], index: 1, kind: input, shape index: {}]   ;;  %s736_s2 = inlined_call_operand.vmem [shape: f32[8,1], index: 2, kind: input, shape index: {}]   ;;  %s737_s3 = inlined_call_operand.vmem [shape: bf16[2,8,288], index: 3, kind: output, shape index: {}]  }
   0x1   :  { %v503_v0 = vld [vmem:[%s734_s0 + $0x4] ss:$12 sps:$4 sm:$0xff]   ;;  %189 = vmatprep.subr.bf16.mxu1 %v513_v1  ;;  %502 = vset.pattern.permute.xlu0 %v513_v1  ;;  %v505_v2 = vld [vmem:[%s734_s0] ss:$12 sps:$4 sm:$0xff]   ;;  %v506_v3 = vld [vmem:[%s734_s0 + $0x8] ss:$12 sps:$4 sm:$0xff]  }
   0x2   :  { %39 = vrot.lane.b32.xlu0 %v503_v0, %s514_s16  ;;  %148 = vmatprep.subr.bf16.mxu0 %v503_v0  ;;  %s516_s20 = smov 110   ;;  %s517_s21 = smov 109   ;;  %v574_v4 = vld [vmem:[%s735_s1] sm:$0xff]  ;;  %v593_v6 = vld [vmem:[%s734_s0 + $0x1c] ss:$12 sps:$4 sm:$0xff]   ;;  %vm67_vm3 = vcmask 900096  }
   0x3   :  { %37 = vrot.lane.b32.xlu1 %v505_v2, %s514_s16  ;;  %149 = vmatpush1.bf16.msra.mxu0 %v505_v2  ;;  %s518_s22 = smov 108   ;;  %s519_s23 = smov 92   ;;  %v579_v5 = vcombine.high %v574_v4, %v574_v4  ;;  %v599_v7 = vld [vmem:[%s734_s0 + $0x20] ss:$12 sps:$4 sm:$0xff]   ;;  %v606_v8 = vld [vmem:[%s734_s0 + $0x18] ss:$12 sps:$4 sm:$0xff]   ;;  %v680_v47 = vcombine.low %v574_v4, %v574_v4 }
   0x4   :  { %190 = vmatpush1.bf16.msra.mxu1 %v506_v3  ;;  %s520_s26 = smov 91   ;;  %s521_s1 = smov 90   ;;  %v16_v9 = vld [vmem:[%s736_s2] sm:$0xff]  ;;  %vm79_vm4 = vcmask 891904   ;;  %vm91_vm5 = vcmask 883712   ;;  %vm103_vm6 = vcmask 752640  }
   0x5   :  { %191 = vmatprep.subr.bf16.mxu1 %v513_v1  ;;  %473 = vmatprep.mubr.msk.bf16.mxu1 %vm144_vm0, %v579_v5  ;;  %vm115_vm7 = vcmask 744448   ;;  %vm127_vm8 = vcmask 736256   ;;  %vm249_vm9 = vcmask 257024  }
   0x6   :  { %41 = vrot.lane.b32.xlu0 %v506_v3, %s514_s16  ;;  %472 = vmatprep.mubr.msk.bf16.mxu0 %vm144_vm0, %v579_v5 }
   0x7   :  { %51 = vrot.lane.b32.xlu1 %v503_v0, %s515_s19 }
   0xa   :  { %53 = vrot.lane.b32.xlu0 %v506_v3, %s515_s19 }
   0xb   :  { %49 = vrot.lane.b32.xlu1 %v505_v2, %s515_s19 }
   0xe   :  { %63 = vrot.lane.b32.xlu0 %v503_v0, %s516_s20 }
   0xf   :  { %65 = vrot.lane.b32.xlu1 %v506_v3, %s516_s20 }
  0x12   :  { %61 = vrot.lane.b32.xlu0 %v505_v2, %s516_s20 }
  0x13   :  { %75 = vrot.lane.b32.xlu1 %v503_v0, %s517_s21 }
  0x16   :  { %77 = vrot.lane.b32.xlu0 %v506_v3, %s517_s21 }
  0x17   :  { %73 = vrot.lane.b32.xlu1 %v505_v2, %s517_s21 }
  0x1a   :  { %87 = vrot.lane.b32.xlu0 %v503_v0, %s518_s22 }
  0x1b   :  { %89 = vrot.lane.b32.xlu1 %v506_v3, %s518_s22 }
  0x1e   :  { %85 = vrot.lane.b32.xlu0 %v505_v2, %s518_s22 }
  0x1f   :  { %99 = vrot.lane.b32.xlu1 %v503_v0, %s519_s23 }
  0x22   :  { %101 = vrot.lane.b32.xlu0 %v506_v3, %s519_s23 }
  0x23   :  { %97 = vrot.lane.b32.xlu1 %v505_v2, %s519_s23 }
  0x26   :  { %111 = vrot.lane.b32.xlu0 %v503_v0, %s520_s26 }
  0x27   :  { %113 = vrot.lane.b32.xlu1 %v506_v3, %s520_s26 }
  0x2a   :  { %109 = vrot.lane.b32.xlu0 %v505_v2, %s520_s26 }
  0x2b   :  { %123 = vrot.lane.b32.xlu1 %v503_v0, %s521_s1 }
  0x2e   :  { %125 = vrot.lane.b32.xlu0 %v506_v3, %s521_s1 }
  0x2f   :  { %121 = vrot.lane.b32.xlu1 %v505_v2, %s521_s1 }
  0x32   :  { %274 = vrot.lane.b32.xlu0 %v593_v6, %s514_s16 }
  0x33   :  { %276 = vrot.lane.b32.xlu1 %v599_v7, %s514_s16 }
  0x36   :  { %272 = vrot.lane.b32.xlu0 %v606_v8, %s514_s16 }
  0x37   :  { %285 = vrot.lane.b32.xlu1 %v593_v6, %s515_s19 }
  0x3a   :  { %287 = vrot.lane.b32.xlu0 %v599_v7, %s515_s19 }
  0x3b   :  { %283 = vrot.lane.b32.xlu1 %v606_v8, %s515_s19 }
  0x3e   :  { %296 = vrot.lane.b32.xlu0 %v593_v6, %s516_s20 }
  0x3f   :  { %298 = vrot.lane.b32.xlu1 %v599_v7, %s516_s20 }
  0x42   :  { %294 = vrot.lane.b32.xlu0 %v606_v8, %s516_s20 }
  0x43   :  { %307 = vrot.lane.b32.xlu1 %v593_v6, %s517_s21 }
  0x46   :  { %309 = vrot.lane.b32.xlu0 %v599_v7, %s517_s21 }
  0x47   :  { %305 = vrot.lane.b32.xlu1 %v606_v8, %s517_s21 }
  0x4a   :  { %318 = vrot.lane.b32.xlu0 %v593_v6, %s518_s22 }
  0x4b   :  { %320 = vrot.lane.b32.xlu1 %v599_v7, %s518_s22 }
  0x4e   :  { %316 = vrot.lane.b32.xlu0 %v606_v8, %s518_s22 }
  0x4f   :  { %329 = vrot.lane.b32.xlu1 %v593_v6, %s519_s23 }
  0x52   :  { %331 = vrot.lane.b32.xlu0 %v599_v7, %s519_s23 }
  0x53   :  { %327 = vrot.lane.b32.xlu1 %v606_v8, %s519_s23 }
  0x56   :  { %340 = vrot.lane.b32.xlu0 %v593_v6, %s520_s26 }
  0x57   :  { %342 = vrot.lane.b32.xlu1 %v599_v7, %s520_s26 }
  0x5a   :  { %338 = vrot.lane.b32.xlu0 %v606_v8, %s520_s26 }
  0x5b   :  { %351 = vrot.lane.b32.xlu1 %v593_v6, %s521_s1 }
  0x5e   :  { %353 = vrot.lane.b32.xlu0 %v599_v7, %s521_s1 }
  0x5f   :  { %349 = vrot.lane.b32.xlu1 %v606_v8, %s521_s1 }
  0x62   :  { %135 = vperm.xlu0 %502, %v16_v9  }
  0x74   :  { %v40_v10 = vpop.permute.xlu0 %39 }
  0x75   :  { %v38_v11 = vpop.permute.xlu1 %37 }
  0x76   :  { %v44_v15 = vsel %vm43_vm1, %v38_v11, %v40_v10 }
  0x78   :  { %v42_v12 = vpop.permute.xlu0 %41 }
  0x79   :  { %v52_v13 = vpop.permute.xlu1 %51  ;;  %192 = vmatpush1.bf16.msra.mxu1 %v42_v12  ;;  %v45_v14 = vsel %vm43_vm1, %v40_v10, %v42_v12 }
  0x7a   :  { %150 = vmatprep.subr.bf16.mxu0 %v45_v14  ;;  %193 = vmatprep.subr.bf16.mxu1 %v513_v1 }
  0x7b   :  { %151 = vmatpush1.bf16.msra.mxu0 %v44_v15 }
  0x7c   :  { %v54_v16 = vpop.permute.xlu0 %53 }
  0x7d   :  { %v50_v17 = vpop.permute.xlu1 %49  ;;  %194 = vmatpush1.bf16.msra.mxu1 %v54_v16  ;;  %v57_v18 = vsel %vm55_vm2, %v52_v13, %v54_v16 }
  0x7e   :  { %152 = vmatprep.subr.bf16.mxu0 %v57_v18  ;;  %v56_v19 = vsel %vm55_vm2, %v50_v17, %v52_v13  ;;  %195 = vmatprep.subr.bf16.mxu1 %v513_v1 }
  0x7f   :  { %153 = vmatpush1.bf16.msra.mxu0 %v56_v19 }
  0x80   :  { %v64_v20 = vpop.permute.xlu0 %63 }
  0x81   :  { %v66_v21 = vpop.permute.xlu1 %65 }
  0x82   :  { %v69_v22 = vsel %vm67_vm3, %v64_v20, %v66_v21  ;;  %196 = vmatpush1.bf16.msra.mxu1 %v66_v21 }
  0x83   :  { %154 = vmatprep.subr.bf16.mxu0 %v69_v22  ;;  %197 = vmatprep.subr.bf16.mxu1 %v513_v1 }
  0x84   :  { %v62_v23 = vpop.permute.xlu0 %61 }
  0x85   :  { %v76_v24 = vpop.permute.xlu1 %75  ;;  %v68_v25 = vsel %vm67_vm3, %v62_v23, %v64_v20 }
  0x86   :  { %155 = vmatpush1.bf16.msra.mxu0 %v68_v25 }
  0x88   :  { %v78_v26 = vpop.permute.xlu0 %77 }
  0x89   :  { %v74_v27 = vpop.permute.xlu1 %73  ;;  %198 = vmatpush1.bf16.msra.mxu1 %v78_v26  ;;  %v81_v28 = vsel %vm79_vm4, %v76_v24, %v78_v26 }
  0x8a   :  { %156 = vmatprep.subr.bf16.mxu0 %v81_v28  ;;  %v80_v29 = vsel %vm79_vm4, %v74_v27, %v76_v24  ;;  %199 = vmatprep.subr.bf16.mxu1 %v513_v1 }
  0x8b   :  { %157 = vmatpush1.bf16.msra.mxu0 %v80_v29 }
  0x8c   :  { %v88_v30 = vpop.permute.xlu0 %87 }
  0x8d   :  { %v90_v31 = vpop.permute.xlu1 %89 }
  0x8e   :  { %v93_v32 = vsel %vm91_vm5, %v88_v30, %v90_v31  ;;  %200 = vmatpush1.bf16.msra.mxu1 %v90_v31 }
  0x8f   :  { %158 = vmatprep.subr.bf16.mxu0 %v93_v32  ;;  %201 = vmatprep.subr.bf16.mxu1 %v513_v1 }
  0x90   :  { %v86_v33 = vpop.permute.xlu0 %85 }
  0x91   :  { %v100_v34 = vpop.permute.xlu1 %99  ;;  %v92_v35 = vsel %vm91_vm5, %v86_v33, %v88_v30 }
  0x92   :  { %159 = vmatpush1.bf16.msra.mxu0 %v92_v35 }
  0x94   :  { %v102_v36 = vpop.permute.xlu0 %101 }
  0x95   :  { %v98_v37 = vpop.permute.xlu1 %97  ;;  %202 = vmatpush1.bf16.msra.mxu1 %v102_v36  ;;  %v105_v38 = vsel %vm103_vm6, %v100_v34, %v102_v36 }
  0x96   :  { %160 = vmatprep.subr.bf16.mxu0 %v105_v38  ;;  %v104_v39 = vsel %vm103_vm6, %v98_v37, %v100_v34  ;;  %203 = vmatprep.subr.bf16.mxu1 %v513_v1 }
  0x97   :  { %161 = vmatpush1.bf16.msra.mxu0 %v104_v39 }
  0x98   :  { %v112_v40 = vpop.permute.xlu0 %111 }
  0x99   :  { %v114_v41 = vpop.permute.xlu1 %113 }
  0x9a   :  { %v117_v42 = vsel %vm115_vm7, %v112_v40, %v114_v41  ;;  %204 = vmatpush1.bf16.msra.mxu1 %v114_v41 }
  0x9b   :  { %162 = vmatprep.subr.bf16.mxu0 %v117_v42  ;;  %205 = vmatprep.subr.bf16.mxu1 %v513_v1 }
  0x9c   :  { %v110_v43 = vpop.permute.xlu0 %109 }
  0x9d   :  { %v124_v44 = vpop.permute.xlu1 %123  ;;  %v116_v45 = vsel %vm115_vm7, %v110_v43, %v112_v40 }
  0x9e   :  { %163 = vmatpush1.bf16.msra.mxu0 %v116_v45 }
  0xa0   :  { %v126_v46 = vpop.permute.xlu0 %125 }
  0xa1   :  { %v122_v48 = vpop.permute.xlu1 %121  ;;  %206 = vmatpush1.bf16.msra.mxu1 %v126_v46  ;;  %v129_v49 = vsel %vm127_vm8, %v124_v44, %v126_v46 }
  0xa2   :  { %164 = vmatprep.subr.bf16.mxu0 %v129_v49  ;;  %v128_v50 = vsel %vm127_vm8, %v122_v48, %v124_v44  ;;  %401 = vmatprep.subr.bf16.mxu1 %v513_v1 }
  0xa3   :  { %165 = vmatpush1.bf16.msra.mxu0 %v128_v50 }
  0xa4   :  { %v275_v51 = vpop.permute.xlu0 %274  ;;  %222 = vmatmul.mubr.bf16.vlgmr.msra.gmra.mrb[0].mxu1 %v680_v47  ;;  %360 = vmatprep.subr.bf16.mxu0 %v593_v6 }
  0xa5   :  { %v277_v52 = vpop.permute.xlu1 %276  ;;  %402 = vmatpush1.bf16.msra.mxu1 %v599_v7  ;;  %484 = vmatprep.mubr.msk.bf16.mxu1 %vm144_vm0, %v579_v5 }
  0xa6   :  { %181 = vmatmul.mubr.bf16.vlgmr.msra.gmra.mrb[0].mxu0 %v680_v47  ;;  %403 = vmatprep.subr.bf16.mxu1 %v513_v1  ;;  %v279_v53 = vsel %vm43_vm1, %v275_v51, %v277_v52 }
  0xa7   :  { %361 = vmatpush1.bf16.msra.mxu0 %v606_v8  ;;  %483 = vmatprep.mubr.msk.bf16.mxu0 %vm144_vm0, %v579_v5 }
  0xa8   :  { %v273_v54 = vpop.permute.xlu0 %272  ;;  %362 = vmatprep.subr.bf16.mxu0 %v279_v53 }
  0xa9   :  { %v278_v55 = vsel %vm43_vm1, %v273_v54, %v275_v51  ;;  %v286_v56 = vpop.permute.xlu1 %285  ;;  %404 = vmatpush1.bf16.msra.mxu1 %v277_v52 }
  0xaa   :  { %405 = vmatprep.subr.bf16.mxu1 %v513_v1 }
  0xab   :  { %363 = vmatpush1.bf16.msra.mxu0 %v278_v55 }
  0xac   :  { %v288_v57 = vpop.permute.xlu0 %287 }
  0xad   :  { %v284_v58 = vpop.permute.xlu1 %283  ;;  %406 = vmatpush1.bf16.msra.mxu1 %v288_v57  ;;  %v290_v59 = vsel %vm55_vm2, %v286_v56, %v288_v57 }
  0xae   :  { %v289_v60 = vsel %vm55_vm2, %v284_v58, %v286_v56  ;;  %364 = vmatprep.subr.bf16.mxu0 %v290_v59  ;;  %407 = vmatprep.subr.bf16.mxu1 %v513_v1 }
  0xaf   :  { %365 = vmatpush1.bf16.msra.mxu0 %v289_v60 }
  0xb0   :  { %v297_v61 = vpop.permute.xlu0 %296 }
  0xb1   :  { %v299_v62 = vpop.permute.xlu1 %298 }
  0xb2   :  { %v301_v63 = vsel %vm67_vm3, %v297_v61, %v299_v62  ;;  %408 = vmatpush1.bf16.msra.mxu1 %v299_v62 }
  0xb3   :  { %366 = vmatprep.subr.bf16.mxu0 %v301_v63  ;;  %409 = vmatprep.subr.bf16.mxu1 %v513_v1 }
  0xb4   :  { %v295_v0 = vpop.permute.xlu0 %294 }
  0xb5   :  { %v300_v2 = vsel %vm67_vm3, %v295_v0, %v297_v61  ;;  %v308_v3 = vpop.permute.xlu1 %307 }
  0xb6   :  { %367 = vmatpush1.bf16.msra.mxu0 %v300_v2 }
  0xb8   :  { %v310_v4 = vpop.permute.xlu0 %309 }
  0xb9   :  { %v306_v5 = vpop.permute.xlu1 %305  ;;  %410 = vmatpush1.bf16.msra.mxu1 %v310_v4  ;;  %v312_v6 = vsel %vm79_vm4, %v308_v3, %v310_v4 }
  0xba   :  { %v311_v7 = vsel %vm79_vm4, %v306_v5, %v308_v3  ;;  %368 = vmatprep.subr.bf16.mxu0 %v312_v6  ;;  %411 = vmatprep.subr.bf16.mxu1 %v513_v1 }
  0xbb   :  { %369 = vmatpush1.bf16.msra.mxu0 %v311_v7 }
  0xbc   :  { %v319_v8 = vpop.permute.xlu0 %318 }
  0xbd   :  { %v321_v9 = vpop.permute.xlu1 %320 }
  0xbe   :  { %v323_v10 = vsel %vm91_vm5, %v319_v8, %v321_v9  ;;  %412 = vmatpush1.bf16.msra.mxu1 %v321_v9 }
  0xbf   :  { %370 = vmatprep.subr.bf16.mxu0 %v323_v10  ;;  %413 = vmatprep.subr.bf16.mxu1 %v513_v1 }
  0xc0   :  { %v317_v11 = vpop.permute.xlu0 %316 }
  0xc1   :  { %v322_v12 = vsel %vm91_vm5, %v317_v11, %v319_v8  ;;  %v330_v13 = vpop.permute.xlu1 %329 }
  0xc2   :  { %371 = vmatpush1.bf16.msra.mxu0 %v322_v12 }
  0xc4   :  { %v332_v14 = vpop.permute.xlu0 %331 }
  0xc5   :  { %v328_v15 = vpop.permute.xlu1 %327  ;;  %414 = vmatpush1.bf16.msra.mxu1 %v332_v14  ;;  %v334_v16 = vsel %vm103_vm6, %v330_v13, %v332_v14 }
  0xc6   :  { %v333_v17 = vsel %vm103_vm6, %v328_v15, %v330_v13  ;;  %372 = vmatprep.subr.bf16.mxu0 %v334_v16  ;;  %415 = vmatprep.subr.bf16.mxu1 %v513_v1 }
  0xc7   :  { %373 = vmatpush1.bf16.msra.mxu0 %v333_v17 }
  0xc8   :  { %v341_v18 = vpop.permute.xlu0 %340 }
  0xc9   :  { %v343_v19 = vpop.permute.xlu1 %342 }
  0xca   :  { %v345_v20 = vsel %vm115_vm7, %v341_v18, %v343_v19  ;;  %416 = vmatpush1.bf16.msra.mxu1 %v343_v19 }
  0xcb   :  { %374 = vmatprep.subr.bf16.mxu0 %v345_v20  ;;  %417 = vmatprep.subr.bf16.mxu1 %v513_v1 }
  0xcc   :  { %v339_v21 = vpop.permute.xlu0 %338 }
  0xcd   :  { %v344_v22 = vsel %vm115_vm7, %v339_v21, %v341_v18  ;;  %v352_v23 = vpop.permute.xlu1 %351 }
  0xce   :  { %375 = vmatpush1.bf16.msra.mxu0 %v344_v22 }
  0xd0   :  { %v354_v24 = vpop.permute.xlu0 %353 }
  0xd1   :  { %v350_v25 = vpop.permute.xlu1 %349  ;;  %418 = vmatpush1.bf16.msra.mxu1 %v354_v24  ;;  %v356_v26 = vsel %vm127_vm8, %v352_v23, %v354_v24 }
  0xd2   :  { %v355_v27 = vsel %vm127_vm8, %v350_v25, %v352_v23  ;;  %376 = vmatprep.subr.bf16.mxu0 %v356_v26 }
  0xd3   :  { %377 = vmatpush1.bf16.msra.mxu0 %v355_v27 }
  0xd4   :  { %434 = vmatmul.mubr.bf16.vlgmr.msra.gmra.mrb[4].mxu1 %v680_v47 }
  0xd6   :  { %393 = vmatmul.mubr.bf16.vlgmr.msra.gmra.mrb[4].mxu0 %v680_v47 }
  0xe1   :  { %v136_v28 = vpop.permute.xlu0 %135 }
 0x177   :  { %v223_v1 = vpop.f32.mrb[0].mxu1 }
 0x178   :  { %v224_v29 = vadd.f32 %v223_v1, %v136_v28  ;;  %v225_v30 = vpop.f32.mrb[1].mxu1 }
 0x179   :  { %v182_v31 = vpop.f32.mrb[0].mxu0  ;;  %v226_v32 = vpop.f32.mrb[2].mxu1 }
 0x17a   :  { %v183_v33 = vadd.f32 %v182_v31, %v136_v28  ;;  %v184_v34 = vpop.f32.mrb[1].mxu0  ;;  %v231_v35 = vmul.f32 0.2, %v224_v29  ;;  %v227_v36 = vpop.f32.mrb[3].mxu1 }
 0x17b   :  { %v185_v37 = vadd.f32 %v184_v34, %v136_v28  ;;  %v186_v38 = vpop.f32.mrb[2].mxu0 }
 0x17c   :  { %v229_v39 = vmul.f32 0.2, %v183_v33  ;;  %v234_v40 = vmax.f32 %v224_v29, %v231_v35  ;;  %v187_v41 = vpop.f32.mrb[3].mxu0 }
 0x17d   :  { %v230_v42 = vmul.f32 0.2, %v185_v37 }
 0x17e   :  { %v232_v43 = vmax.f32 %v183_v33, %v229_v39  ;;  %v490_v44 = vpack.c.bf16 %v234_v40, %v234_v40 }
 0x17f   :  { %v233_v45 = vmax.f32 %v185_v37, %v230_v42 }
 0x180   :  { %250 = vst.msk [vmem:[%s737_s3 + $0x8] sm:$0xf] %vm249_vm9, %v490_v44 }
 0x181   :  { %v489_v46 = vpack.c.bf16 %v233_v45, %v232_v43 }
 0x183   :  { %248 = vst [vmem:[%s737_s3] sm:$0xff] %v489_v46 }
 0x1a7   :  { %v435_v47 = vpop.f32.mrb[4].mxu1 }
 0x1a8   :  { %v436_v48 = vadd.f32 %v435_v47, %v136_v28  ;;  %v437_v49 = vpop.f32.mrb[5].mxu1 }
 0x1a9   :  { %v394_v50 = vpop.f32.mrb[4].mxu0  ;;  %v438_v51 = vpop.f32.mrb[6].mxu1 }
 0x1aa   :  { %v443_v52 = vmul.f32 0.2, %v436_v48  ;;  %v395_v53 = vadd.f32 %v394_v50, %v136_v28  ;;  %v396_v54 = vpop.f32.mrb[5].mxu0  ;;  %v439_v55 = vpop.f32.mrb[7].mxu1 }
 0x1ab   :  { %v397_v56 = vadd.f32 %v396_v54, %v136_v28  ;;  %v398_v57 = vpop.f32.mrb[6].mxu0 }
 0x1ac   :  { %v446_v58 = vmax.f32 %v436_v48, %v443_v52  ;;  %v441_v59 = vmul.f32 0.2, %v395_v53  ;;  %v399_v60 = vpop.f32.mrb[7].mxu0 }
 0x1ad   :  { %v442_v61 = vmul.f32 0.2, %v397_v56 }
 0x1ae   :  { %v492_v62 = vpack.c.bf16 %v446_v58, %v446_v58  ;;  %v444_v63 = vmax.f32 %v395_v53, %v441_v59 }
 0x1af   :  { %v445_v0 = vmax.f32 %v397_v56, %v442_v61 }
 0x1b0   :  { %488 = vst.msk [vmem:[%s737_s3 + $0x14] sm:$0xf] %vm249_vm9, %v492_v62 }
 0x1b1   :  { %v491_v2 = vpack.c.bf16 %v445_v0, %v444_v63 }
 0x1b3   :  { %487 = vst [vmem:[%s737_s3 + $0xc] sm:$0xff] %v491_v2 }

</bundles_post_ra>
